<compile_context>
chip_gen: v5e
topology: v5e:2x2
jax: 0.10.0
libtpu: 0.0.40
codegen_flags: <defaults>
</compile_context>

<pallas_src>
import jax
import jax.numpy as jnp
from jax.experimental import pallas as pl
from jax.experimental.pallas import tpu as pltpu

HIDDEN = 32        # config.hidden_size (small synthetic value)
NUM_LABELS = 9     # forward slices [..., :8] and [..., -1:] => 9 labels
NUM_CLS = 8
VOCAB = 100
MAX_TM = 8192      # tokens (lanes) per tile
LANE = 128


def _cdiv(a, b):
    return -(-a // b)


def fused_head_kernel(ids_ref, table_t_ref, out_ref):
    # ids_ref:     [1, TM]            int32  (token ids, lane-major)
    # table_t_ref: [NUM_LABELS, VOCAB] bf16  (pre-fused (emb_table @ W + b)^T)
    # out_ref:     [NUM_LABELS, TM]    f32   (transposed logits)
    tm = ids_ref.shape[1]

    # --- fused embedding+linear gather: transposed one-hot matmul on MXU ---
    # one_hot_t[v, t] = (v == ids[t]); 0/1 is exact in bf16 and exactly one
    # term per output column is non-zero, so only the bf16 rounding of the
    # fused table contributes error.  f32 accumulation.
    ids = ids_ref[...]                                                # [1, TM]
    vocab_row = jax.lax.broadcasted_iota(jnp.int32, (VOCAB, tm), 0)
    one_hot_t = (vocab_row == ids).astype(jnp.bfloat16)               # [V, TM]
    preds_t = jnp.dot(table_t_ref[...], one_hot_t,
                      preferred_element_type=jnp.float32)             # [L, TM]

    # --- softmax over the 8 class rows (lane-dense vregs) -------------------
    cls = preds_t[:NUM_CLS, :]                                        # [8, TM]
    m = jnp.max(cls, axis=0, keepdims=True)                           # [1, TM]
    e = jnp.exp(cls - m)
    denom = jnp.sum(e, axis=0, keepdims=True)
    out_ref[:NUM_CLS, :] = e * pl.reciprocal(denom, approx=True)      # EUP div

    # --- numerically-stable sigmoid on the single head row ------------------
    # sigmoid(x) = 1/(1+z) if x >= 0 else z/(1+z), with z = exp(-|x|) <= 1.
    head = preds_t[NUM_CLS:NUM_CLS + 1, :]                            # [1, TM]
    z = jnp.exp(-jnp.abs(head))
    r = pl.reciprocal(1.0 + z, approx=True)                           # EUP div
    out_ref[NUM_CLS:, :] = jnp.where(head >= 0, r, z * r)


def _num_tensorcores():
    # Best-effort: >1 only on multi-TC chips (v7x).  Falls back to 1 so the
    # choice only affects performance, never correctness.
    try:
        return max(1, int(getattr(jax.devices()[0], "num_cores", 1)))
    except Exception:  # pragma: no cover
        return 1


def _choose_tiling(m_rows, n_cores):
    """Pick (tm, steps): tm lane-multiple, steps a multiple of n_cores."""
    steps = max(n_cores, _cdiv(m_rows, MAX_TM))
    steps = _cdiv(steps, n_cores) * n_cores
    tm = min(MAX_TM, _cdiv(_cdiv(m_rows, steps), LANE) * LANE)
    steps = _cdiv(_cdiv(m_rows, tm), n_cores) * n_cores
    return tm, steps


def text_model9_head(ids_2d, fused_table_t, tm, steps):
    # ids_2d: [1, m_pad] int32, fused_table_t: [NUM_LABELS, VOCAB] bf16
    m_pad = ids_2d.shape[1]
    assert m_pad == tm * steps
    assert fused_table_t.shape == (NUM_LABELS, VOCAB)
    return pl.pallas_call(
        fused_head_kernel,
        out_shape=jax.ShapeDtypeStruct((NUM_LABELS, m_pad), jnp.float32),
        grid_spec=pltpu.PrefetchScalarGridSpec(
            num_scalar_prefetch=0,
            grid=(steps,),
            in_specs=[
                pl.BlockSpec((1, tm), lambda i: (0, i)),                  # ids
                pl.BlockSpec((NUM_LABELS, VOCAB), lambda i: (0, 0)),      # table^T
            ],
            out_specs=pl.BlockSpec((NUM_LABELS, tm), lambda i: (0, i)),
        ),
        compiler_params=pltpu.CompilerParams(
            dimension_semantics=("parallel",)),
    )(ids_2d, fused_table_t)


def text_model9_forward(input_ids, attention_mask, params):
    """Forward pass (labels=None path): returns logits [B, S, NUM_LABELS]."""
    del attention_mask  # only used by the (untranslated) backbone / loss path
    B, S = input_ids.shape
    M = B * S
    tm, steps = _choose_tiling(M, _num_tensorcores())
    m_pad = tm * steps

    # Fold Linear into the table offline ([VOCAB,H]@[H,L]+[L] -> [VOCAB,L]);
    # 5 dropout branches are identity at inference => mean == single pass.
    fused = params["emb_table"] @ params["w"] + params["b"]           # f32
    fused_t = fused.T.astype(jnp.bfloat16)                            # [L, V]

    ids_flat = input_ids.reshape(M).astype(jnp.int32)
    if m_pad != M:
        ids_flat = jnp.pad(ids_flat, (0, m_pad - M))   # padded cols sliced off
    ids_2d = ids_flat.reshape(1, m_pad)

    out_t = text_model9_head(ids_2d, fused_t, tm, steps)              # [L, m_pad]
    return out_t[:, :M].T.reshape(B, S, NUM_LABELS)


def reference_forward(input_ids, attention_mask, params):
    del attention_mask
    emb = params["emb_table"][input_ids]
    preds = emb @ params["w"] + params["b"]
    logits1 = jax.nn.softmax(preds[..., :NUM_CLS], axis=-1)
    logits2 = jax.nn.sigmoid(preds[..., -1:])
    return jnp.concatenate([logits1, logits2], axis=-1)


if __name__ == "__main__":
    key = jax.random.PRNGKey(0)
    k_emb, k_w, k_b, k_ids = jax.random.split(key, 4)

    B, S = 2, 8
    params = {
        # synthetic deterministic "backbone": embedding lookup table
        "emb_table": jax.random.normal(k_emb, (VOCAB, HIDDEN), jnp.float32) * 0.5,
        # nn.Linear(hidden_size, num_labels): weight stored transposed [H, L]
        "w": jax.random.normal(k_w, (HIDDEN, NUM_LABELS), jnp.float32) * 0.1,
        "b": jax.random.normal(k_b, (NUM_LABELS,), jnp.float32) * 0.1,
    }

    input_ids = jax.random.randint(k_ids, (B, S), 0, VOCAB, jnp.int32)
    attention_mask = jnp.ones((B, S), jnp.int32)

    logits = text_model9_forward(input_ids, attention_mask, params)
    logits = jax.block_until_ready(logits)

    ref = reference_forward(input_ids, attention_mask, params)
    assert logits.shape == (B, S, NUM_LABELS)
    # bf16 fused table (~1e-3 rel) + EUP approx reciprocal (~1e-3 rel)
    assert jnp.allclose(logits, ref, atol=3e-3, rtol=3e-3), \
        float(jnp.max(jnp.abs(logits - ref)))

    # TODO(synk): get_loss (CrossEntropy + BCEWithLogits over active tokens)
    # is only exercised when labels are provided; not implemented here.
    print("KERNEL_OK")
</pallas_src>

<mosaic_0001>
module attributes {stable_mosaic.version = 11 : i64} {
  func.func @fused_head_kernel(%arg0: i32, %arg1: memref<1x128xi32, #tpu.memory_space<vmem>>, %arg2: memref<9x100xbf16, #tpu.memory_space<vmem>>, %arg3: memref<9x128xf32, #tpu.memory_space<vmem>>) attributes {dimension_semantics = [#tpu.dimension_semantics<parallel>], iteration_bounds = array<i64: 1>, scalar_prefetch = 0 : i64, scratch_operands = 0 : i64, tpu.core_type = #tpu.core_type<tc>, window_params = [{transform_indices = @transform_0, window_bounds = array<i64: 1, 128>}, {pipeline_mode = #tpu.pipeline_mode<synchronous>, transform_indices = @transform_1, window_bounds = array<i64: 9, 100>}, {transform_indices = @transform_2, window_bounds = array<i64: 9, 128>}]} {
    %c0 = arith.constant 0 : index
    %c0_0 = arith.constant 0 : index
    %0 = vector.load %arg1[%c0, %c0_0] : memref<1x128xi32, #tpu.memory_space<vmem>>, vector<1x128xi32>
    %1 = tpu.iota {dimensions = array<i32: 0>} : vector<100x128xi32>
    %2 = vector.broadcast %0 : vector<1x128xi32> to vector<100x128xi32>
    %3 = arith.cmpi eq, %1, %2 : vector<100x128xi32>
    %4 = arith.extui %3 : vector<100x128xi1> to vector<100x128xi32>
    %5 = arith.sitofp %4 : vector<100x128xi32> to vector<100x128xf32>
    %6 = arith.truncf %5 : vector<100x128xf32> to vector<100x128xbf16>
    %c0_1 = arith.constant 0 : index
    %c0_2 = arith.constant 0 : index
    %7 = vector.load %arg2[%c0_1, %c0_2] : memref<9x100xbf16, #tpu.memory_space<vmem>>, vector<9x100xbf16>
    %cst = arith.constant dense<0.000000e+00> : vector<9x128xf32>
    %8 = tpu.matmul %7, %6, %cst {dimension_numbers = #tpu.dot_dimension_numbers<[1], [0], [0], [1], [0, 0, 1, 1], [], []>} : vector<9x100xbf16>, vector<100x128xbf16>, vector<9x128xf32> -> vector<9x128xf32>
    %9 = vector.extract_strided_slice %8 {offsets = [0, 0], sizes = [8, 128], strides = [1, 1]} : vector<9x128xf32> to vector<8x128xf32>
    %cst_3 = arith.constant dense<0xFF800000> : vector<128xf32>
    %10 = vector.multi_reduction <maximumf>, %9, %cst_3 [0] : vector<8x128xf32> to vector<128xf32>
    %11 = vector.shape_cast %10 : vector<128xf32> to vector<1x128xf32>
    %12 = vector.broadcast %11 : vector<1x128xf32> to vector<8x128xf32>
    %13 = arith.subf %9, %12 : vector<8x128xf32>
    %14 = math.exp %13 : vector<8x128xf32>
    %cst_4 = arith.constant dense<0.000000e+00> : vector<128xf32>
    %15 = vector.multi_reduction <add>, %14, %cst_4 [0] : vector<8x128xf32> to vector<128xf32>
    %16 = vector.shape_cast %15 : vector<128xf32> to vector<1x128xf32>
    %17 = tpu.reciprocal %16 {approx = true} : vector<1x128xf32> -> vector<1x128xf32>
    %18 = vector.broadcast %17 : vector<1x128xf32> to vector<8x128xf32>
    %19 = arith.mulf %14, %18 : vector<8x128xf32>
    %c0_5 = arith.constant 0 : index
    %c0_6 = arith.constant 0 : index
    %20 = vector.load %arg3[%c0_5, %c0_6] : memref<9x128xf32, #tpu.memory_space<vmem>>, vector<8x128xf32>
    tpu.vector_store %arg3[%c0_5, %c0_6], %19 {strides = array<i32>} : memref<9x128xf32, #tpu.memory_space<vmem>>, vector<8x128xf32>,
    %21 = vector.extract_strided_slice %8 {offsets = [8, 0], sizes = [1, 128], strides = [1, 1]} : vector<9x128xf32> to vector<1x128xf32>
    %22 = math.absf %21 : vector<1x128xf32>
    %cst_7 = arith.constant 0.000000e+00 : f32
    %23 = vector.broadcast %cst_7 : f32 to vector<1x128xf32>
    %24 = arith.subf %23, %22 : vector<1x128xf32>
    %25 = math.exp %24 : vector<1x128xf32>
    %cst_8 = arith.constant 1.000000e+00 : f32
    %26 = vector.broadcast %cst_8 : f32 to vector<1x128xf32>
    %27 = arith.addf %26, %25 : vector<1x128xf32>
    %28 = tpu.reciprocal %27 {approx = true} : vector<1x128xf32> -> vector<1x128xf32>
    %cst_9 = arith.constant 0.000000e+00 : f32
    %29 = vector.broadcast %cst_9 : f32 to vector<1x128xf32>
    %30 = arith.cmpf oge, %21, %29 : vector<1x128xf32>
    %31 = arith.mulf %25, %28 : vector<1x128xf32>
    %32 = arith.select %30, %28, %31 : vector<1x128xi1>, vector<1x128xf32>
    %c8 = arith.constant 8 : index
    %c0_10 = arith.constant 0 : index
    %33 = vector.load %arg3[%c8, %c0_10] : memref<9x128xf32, #tpu.memory_space<vmem>>, vector<1x128xf32>
    tpu.vector_store %arg3[%c8, %c0_10], %32 {strides = array<i32>} : memref<9x128xf32, #tpu.memory_space<vmem>>, vector<1x128xf32>,
    return
  }
  func.func @transform_0(%arg0: i32) -> (i32, i32) {
    %c0_i32 = arith.constant 0 : i32
    %c0_i32_0 = arith.constant 0 : i32
    return %c0_i32, %arg0 : i32, i32
  }
  func.func @transform_1(%arg0: i32) -> (i32, i32) {
    %c0_i32 = arith.constant 0 : i32
    %c0_i32_0 = arith.constant 0 : i32
    %c0_i32_1 = arith.constant 0 : i32
    return %c0_i32, %c0_i32_0 : i32, i32
  }
  func.func @transform_2(%arg0: i32) -> (i32, i32) {
    %c0_i32 = arith.constant 0 : i32
    %c0_i32_0 = arith.constant 0 : i32
    return %c0_i32, %arg0 : i32, i32
  }
}

</mosaic_0001>

<bundles_post_ra>
// kernel: tpu_custom_call.1
= control target key start
LH: loop header
LB: loop body
LE: loop exit
PB: predicated region body
PF: predicated region fallthrough
CT: control target
= control target key end

     0   :  { %7 = vsyncpa [#allocation3], 0  ;;  %s342_s0 = inlined_call_operand.hbm [shape: s32[1,128], index: 0, kind: input, shape index: {}]   ;;  %s343_s1 = inlined_call_operand.hbm [shape: bf16[9,100], index: 1, kind: input, shape index: {}]   ;;  %s344_s2 = inlined_call_operand.hbm [shape: f32[9,128], index: 2, kind: output, shape index: {}]  }
   0x1   :  { %8 = vsyncpa [#allocation6], 0 }
   0x2   :  { %9 = vsyncpa [#allocation4], 0  ;;  %s15_s11 = sshll.u32 %s342_s0, 4  ;;  %s309_s12 = smov [#allocation2]   ;;  %s16_s11 = int_to_ptr.hbm [resolvable:$true] %s15_s11 }
   0x3   :  { %s17_s13 = sshll.u32 %s309_s12, 4  ;;  %s25_s16 = sshll.u32 %s343_s1, 4  ;;  %s18_s13 = int_to_ptr.vmem [resolvable:$true] %s17_s13  ;;  %s26_s16 = int_to_ptr.hbm [resolvable:$true] %s25_s16 }
   0x4   :  { %20 = dma.hbm_to_vmem [thread:$0]  %s16_s11, 16, %s18_s13, [#allocation3]  }
   0x5   :  { %s310_s17 = smov [#allocation5]   ;;  %s311_s19 = smov 64  }
   0x6   :  { %s27_s18 = sshll.u32 %s310_s17, 4  ;;  %s312_s20 = smov 4   ;;  %s28_s18 = int_to_ptr.vmem [resolvable:$true] %s27_s18 }
   0x7   :  { %33 = dma.hbm_to_vmem [thread:$0]  %s26_s16, 128, %s28_s18, [#allocation6], %s311_s19, %s311_s19, %s312_s20  }
   0x8   :  { %303 = dma.done.wait [#allocation3], 16  }
   0x9   :  { %304 = vsyncadd [#allocation3], 4294967280 }
   0xa   :  { %305 = dma.done.wait [#allocation6], 128  }
   0xb   :  { %306 = vsyncadd [#allocation6], 4294967168  ;;  %v44_v0 = vlaneseq  ;;  %v222_v3 = vld [vmem:[#allocation2] ss:$0 sm:$0xff]  ;;  %v313_v6 = vmov 0.0   ;;  %vm116_vm1 = vcmask 1041408  }
   0xc   :  { %v314_v14 = vmov 1.0|1.0   ;;  %v197_v20 = vld [vmem:[#allocation5] sm:$0xf]  ;;  %v212_v21 = vld [vmem:[#allocation5] sm:$0x10] }
   0xd   :  { %v45_v1 = vshrl.u32 %v44_v0, 7  ;;  %v198_v22 = vor.u32 %v212_v21, %v197_v20  ;;  %s315_s0 = smov [#allocation7]   ;;  %s168_s23 = sshll.u32 %s344_s2, 4  ;;  %s169_s23 = int_to_ptr.hbm [resolvable:$true] %s168_s23 }
   0xe   :  { %s166_s1 = sshll.u32 %s315_s0, 4  ;;  %s316_s24 = smov 128   ;;  %s167_s1 = int_to_ptr.vmem [resolvable:$true] %s166_s1 }
   0xf   :  { %v57_v2 = vadd.s32 96, %v45_v1  ;;  %v55_v4 = vadd.s32 80, %v45_v1  ;;  %v56_v5 = vadd.s32 88, %v45_v1  ;;  %v53_v9 = vadd.s32 64, %v45_v1  ;;  %s317_s25 = smov 8  }
  0x10   :  { %v54_v10 = vadd.s32 72, %v45_v1  ;;  %v51_v12 = vadd.s32 48, %v45_v1  ;;  %v52_v13 = vadd.s32 56, %v45_v1  ;;  %v49_v15 = vadd.s32 32, %v45_v1 }
  0x11   :  { %vm71_vm0 = vcmp.eq.s32.totalorder %v57_v2, %v222_v3  ;;  %vm69_vm2 = vcmp.eq.s32.totalorder %v55_v4, %v222_v3  ;;  %vm70_vm3 = vcmp.eq.s32.totalorder %v56_v5, %v222_v3  ;;  %vm67_vm5 = vcmp.eq.s32.totalorder %v53_v9, %v222_v3 }
  0x12   :  { %v194_v7 = vsel %vm71_vm0, 1.0, %v313_v6  ;;  %vm199_vm4 = vmpackc.low %vm70_vm3, %vm69_vm2  ;;  %vm68_vm6 = vcmp.eq.s32.totalorder %v54_v10, %v222_v3  ;;  %vm65_vm8 = vcmp.eq.s32.totalorder %v51_v12, %v222_v3  ;;  %vm66_vm9 = vcmp.eq.s32.totalorder %v52_v13, %v222_v3 }
  0x13   :  { %v104_v8 = vpack.c.bf16 %v194_v7, %v194_v7  ;;  %vm201_vm7 = vmpackc.low %vm68_vm6, %vm67_vm5  ;;  %v50_v16 = vadd.s32 40, %v45_v1  ;;  %vm63_vm11 = vcmp.eq.s32.totalorder %v49_v15, %v222_v3  ;;  %v47_v17 = vadd.s32 16, %v45_v1 }
  0x14   :  { %vm203_vm10 = vmpackc.low %vm66_vm9, %vm65_vm8  ;;  %v48_v18 = vadd.s32 24, %v45_v1  ;;  %v46_v19 = vadd.s32 8, %v45_v1 }
  0x15   :  { %v118_v11 = vsel %vm116_vm1, %v104_v8, 0  ;;  %vm64_vm12 = vcmp.eq.s32.totalorder %v50_v16, %v222_v3  ;;  %vm61_vm14 = vcmp.eq.s32.totalorder %v47_v17, %v222_v3  ;;  %vm59_vm1 = vcmp.eq.s32.totalorder %v45_v1, %v222_v3 }
  0x16   :  { %121 = vmatpush.bf16.msra.mxu0 %v118_v11  ;;  %vm205_vm13 = vmpackc.low %vm64_vm12, %vm63_vm11  ;;  %vm62_vm15 = vcmp.eq.s32.totalorder %v48_v18, %v222_v3  ;;  %vm60_vm2 = vcmp.eq.s32.totalorder %v46_v19, %v222_v3 }
  0x17   :  { %vm207_vm0 = vmpackc.low %vm62_vm15, %vm61_vm14 }
  0x18   :  { %vm209_vm3 = vmpackc.low %vm60_vm2, %vm59_vm1 }
  0x1a   :  { %200 = vmatpush.bf16.msk.msra.mxu0 %vm199_vm4, %v314_v14  ;;  %vm112_vm4 = vcmask 818176  }
  0x1e   :  { %202 = vmatpush.bf16.msk.msra.mxu0 %vm201_vm7, %v314_v14 }
  0x22   :  { %204 = vmatpush.bf16.msk.msra.mxu0 %vm203_vm10, %v314_v14 }
  0x26   :  { %206 = vmatpush.bf16.msk.msra.mxu0 %vm205_vm13, %v314_v14 }
  0x2a   :  { %208 = vmatpush.bf16.msk.msra.mxu0 %vm207_vm0, %v314_v14 }
  0x2e   :  { %210 = vmatpush.bf16.msk.msra.mxu0 %vm209_vm3, %v314_v14 }
  0x31   :  { %211 = vmatmul.msk.bf16.vlgmr.msra.gmra.mxu0 %vm112_vm4, %v198_v22 }
  0xae   :  { %v129_v23 = vpop.f32.mrf.mxu0 }
  0xaf   :  { %v134_v24 = vrot.slane %v129_v23, 4 }
  0xb1   :  { %v135_v25 = vmax.f32 %v129_v23, %v134_v24 }
  0xb3   :  { %v136_v26 = vrot.slane %v135_v25, 2 }
  0xb5   :  { %v137_v27 = vmax.f32 %v135_v25, %v136_v26 }
  0xb6   :  { %v131_v28 = vpop.f32.mrf.mxu0 }
  0xb7   :  { %v138_v29 = vrot.slane %v137_v27, 1  ;;  %v152_v30 = vand.u32 2147483647, %v131_v28  ;;  %vm158_vm5 = vcmp.ge.f32.partialorder %v131_v28, 0.0 }
  0xb9   :  { %v139_v31 = vmax.f32 %v137_v27, %v138_v29  ;;  %v153_v32 = vsub.f32 0.0, %v152_v30 }
  0xbb   :  { %v140_v33 = vsub.f32 %v129_v23, %v139_v31  ;;  %v154_v34 = vmul.f32 1.442695, %v153_v32 }
  0xbd   :  { %v141_v35 = vmul.f32 1.442695, %v140_v33  ;;  %223 = vpow2.f32 %v154_v34 }
  0xbf   :  { %225 = vpow2.f32 %v141_v35 }
  0xc3   :  { %v224_v36 = vpop.eup %223 }
  0xc4   :  { %v156_v37 = vadd.f32 1.0, %v224_v36 }
  0xc5   :  { %v226_v38 = vpop.eup %225 }
  0xc6   :  { %v143_v39 = vrot.slane %v226_v38, 4  ;;  %227 = vrcp.f32 %v156_v37 }
  0xc8   :  { %v144_v40 = vadd.f32 %v226_v38, %v143_v39 }
  0xca   :  { %v145_v41 = vrot.slane %v144_v40, 2 }
  0xcc   :  { %v228_v42 = vpop.eup %227  ;;  %v146_v43 = vadd.f32 %v145_v41, %v144_v40 }
  0xcd   :  { %v159_v44 = vmul.f32 %v228_v42, %v224_v36 }
  0xce   :  { %v147_v45 = vrot.slane %v146_v43, 1 }
  0xcf   :  { %v160_v46 = vsel %vm158_vm5, %v228_v42, %v159_v44 }
  0xd0   :  { %161 = vst [vmem:[#allocation7 + $0x8] sm:$0x1] %v160_v46  ;;  %v148_v47 = vadd.f32 %v147_v45, %v146_v43 }
  0xd2   :  { %229 = vrcp.f32 %v148_v47 }
  0xd8   :  { %v230_v48 = vpop.eup %229 }
  0xd9   :  { %v150_v49 = vmul.f32 %v230_v48, %v226_v38 }
  0xdb   :  { %151 = vst [vmem:[#allocation7] sm:$0xff] %v150_v49 }
  0xdc   :  { %174 = dma.vmem_to_hbm [thread:$0]  %s167_s1, 256, %s169_s23, [#allocation4], %s316_s24, %s316_s24, %s317_s25  }
  0xdd   :  { %307 = dma.done.wait [#allocation4], 256  }
  0xde   :  { %308 = vsyncadd [#allocation4], 4294967040 }
  0xdf   :  { %179 = vsyncpa [#allocation3], 1 }
  0xe0   :  { %180 = vsyncpa [#allocation6], 1 }
  0xe1   :  { %181 = vsyncpa [#allocation4], 1 }

</bundles_post_ra>
